<compile_context>
chip_gen: v7x
topology: tpu7x:2x2x1
jax: 0.10.0
libtpu: 0.0.40
codegen_flags: <defaults>
</compile_context>

<pallas_src>
import functools

import jax
import jax.numpy as jnp
from jax.experimental import pallas as pl
from jax.experimental.pallas import tpu as pltpu

LANE = 128
BATCH_ALIGN = 16   # batch-tile granularity (covers bf16 sublane packing)


def _round_up(x, m):
    return (x + m - 1) // m * m


def _cdiv(a, b):
    return -(-a // b)


# ------------------------------ Pallas kernel ------------------------------- #
def _fused_mlp_kernel(ids_ref, x_ref, w1_ref, b1_ref, w2_ref, b2_ref,
                      w3_ref, b3_ref, o_ref, lhs_scr, *, dense_lanes):
    # ids_ref: [B_TILE, 3] int32   categorical ids, table offsets pre-added
    # x_ref:   [B_TILE, D_DENSE]   dense features (compute dtype)
    # w1_ref:  [K1, H_PAD]         vstack(W1 dense rows, fused emb@W1 tables)
    # w2_ref:  [H_PAD, H_PAD]; w3_ref: [H_PAD, OUT_PAD]; biases [1,*] (f32)
    # o_ref:   [B_TILE, 1]         real scalar prediction per row
    # lhs_scr: [B_TILE, K1]        VMEM scratch holding the assembled layer-1 LHS
    x = x_ref[...]
    ids = ids_ref[...]
    bt, d_dense = x.shape
    emb_lanes = lhs_scr.shape[1] - dense_lanes

    # Combined one-hot over (store, weekday, monthday): offsets were folded
    # into the ids on the host, so a single iota + three compares suffices.
    lanes = jax.lax.broadcasted_iota(jnp.int32, (bt, emb_lanes), 1)
    onehot = ((lanes == ids[:, 0:1]) | (lanes == ids[:, 1:2])
              | (lanes == ids[:, 2:3])).astype(lhs_scr.dtype)

    # Assemble the layer-1 LHS in VMEM scratch:
    #   lanes [0, d_dense)               dense features
    #   lanes [d_dense, dense_lanes)     zeros (matching zero rows of W1 stack)
    #   lanes [dense_lanes, K1)          combined one-hot
    lhs_scr[...] = jnp.zeros_like(lhs_scr)
    lhs_scr[:, :d_dense] = x
    lhs_scr[:, dense_lanes:] = onehot

    # Layer 1: one K = dense_lanes + emb_lanes MXU pass (embeddings are exact:
    # one-hot rows select precomputed emb@W1 rows with 0/1 weights).
    h1 = jnp.dot(lhs_scr[...], w1_ref[...], preferred_element_type=jnp.float32)
    h1 = jnp.maximum(h1 + b1_ref[...], 0.0)          # f32 bias add + ReLU

    # Layer 2
    h2 = jnp.dot(h1.astype(w2_ref.dtype), w2_ref[...],
                 preferred_element_type=jnp.float32)
    h2 = jnp.maximum(h2 + b2_ref[...], 0.0)

    # Layer 3 — only lane 0 of the padded result is real; store just that.
    out = jnp.dot(h2.astype(w3_ref.dtype), w3_ref[...],
                  preferred_element_type=jnp.float32) + b3_ref[...]
    o_ref[...] = out[:, :1].astype(o_ref.dtype)


def fused_mlp_forward(ids, x, w1s, b1, w2, b2, w3, b3, *, block_b, dense_lanes):
    """Batch-tiled fused embedding-lookup + 3-layer MLP."""
    bp, d_dense = x.shape
    k1, h_pad = w1s.shape
    out_pad = w3.shape[1]
    assert bp % block_b == 0

    kernel = functools.partial(_fused_mlp_kernel, dense_lanes=dense_lanes)

    def resident(shape):
        # Weights/biases: same block every grid step -> stay VMEM-resident.
        return pl.BlockSpec(shape, lambda i: (0, 0))

    return pl.pallas_call(
        kernel,
        out_shape=jax.ShapeDtypeStruct((bp, 1), jnp.float32),
        grid=(bp // block_b,),
        in_specs=[
            pl.BlockSpec((block_b, 3), lambda i: (i, 0)),        # ids (streamed)
            pl.BlockSpec((block_b, d_dense), lambda i: (i, 0)),  # dense x (streamed)
            resident((k1, h_pad)),                               # stacked W1 / emb tables
            resident((1, h_pad)),                                # b1
            resident((h_pad, h_pad)),                            # W2
            resident((1, h_pad)),                                # b2
            resident((h_pad, out_pad)),                          # W3
            resident((1, out_pad)),                              # b3
        ],
        out_specs=pl.BlockSpec((block_b, 1), lambda i: (i, 0)),
        scratch_shapes=[pltpu.VMEM((block_b, k1), x.dtype)],
        compiler_params=pltpu.CompilerParams(
            dimension_semantics=("parallel",)),                  # megacore on v7x
    )(ids, x, w1s, b1, w2, b2, w3, b3)


# --------------------------- Model (params + glue) --------------------------- #
class FeedforwardModelPallas:
    def __init__(self, key, n_stores, n_weekday, n_monthday, input_dim,
                 hidden_size, n_store_features=10, n_weekday_features=2,
                 n_monthday_features=5, compute_dtype=jnp.bfloat16,
                 block_b=2048):
        assert input_dim > 3, "need at least one dense feature column"
        self.n_stores = n_stores
        self.n_weekday = n_weekday
        self.n_monthday = n_monthday
        self.input_dim = input_dim
        self.hidden_size = hidden_size
        self.n_store_features = n_store_features
        self.n_weekday_features = n_weekday_features
        self.n_monthday_features = n_monthday_features
        self.compute_dtype = compute_dtype
        self.block_b = block_b
        self.d_dense = input_dim - 3
        self.n_inputs = (n_store_features + n_weekday_features
                         + n_monthday_features + input_dim - 3)

        ks = jax.random.split(key, 9)

        # Embedding tables (nn.Embedding default: N(0, 1)).
        self.store_emb = jax.random.normal(ks[0], (n_stores, n_store_features), jnp.float32)
        self.weekday_emb = jax.random.normal(ks[1], (n_weekday, n_weekday_features), jnp.float32)
        self.month_emb = jax.random.normal(ks[2], (n_monthday, n_monthday_features), jnp.float32)

        # Linear layers (nn.Linear default: U(-1/sqrt(fan_in), 1/sqrt(fan_in))).
        def linear(kw, kb, fan_in, fan_out):
            lim = 1.0 / float(fan_in) ** 0.5
            w = jax.random.uniform(kw, (fan_in, fan_out), jnp.float32, -lim, lim)
            b = jax.random.uniform(kb, (1, fan_out), jnp.float32, -lim, lim)
            return w, b

        self.w1, self.b1 = linear(ks[3], ks[4], self.n_inputs, hidden_size)
        self.w2, self.b2 = linear(ks[5], ks[6], hidden_size, hidden_size)
        self.w3, self.b3 = linear(ks[7], ks[8], hidden_size, 1)

        self._prepare_kernel_params()

    def _prepare_kernel_params(self):
        h = self.hidden_size
        dd = self.d_dense
        nsf, nwf, nmf = (self.n_store_features, self.n_weekday_features,
                         self.n_monthday_features)

        self.H_PAD = _round_up(h, LANE)
        self.OUT_PAD = LANE
        self.dense_lanes = _round_up(max(dd, 1), LANE)

        # Row offsets of each category inside the one-hot region.
        self.store_off = 0
        self.week_off = self.n_stores
        self.month_off = self.n_stores + self.n_weekday
        n_emb = self.month_off + self.n_monthday
        self.emb_lanes = _round_up(max(n_emb, 1), LANE)
        self.K1 = self.dense_lanes + self.emb_lanes

        # W1 split by input group; embedding tables pre-folded into layer 1:
        #   one_hot @ (emb @ W1_slice) == emb[idx] @ W1_slice   (exact, 0/1 weights)
        w1_s = self.w1[:nsf]
        w1_w = self.w1[nsf:nsf + nwf]
        w1_m = self.w1[nsf + nwf:nsf + nwf + nmf]
        w1_d = self.w1[nsf + nwf + nmf:]                       # [d_dense, H]

        dl = self.dense_lanes
        w1s = jnp.zeros((self.K1, self.H_PAD), jnp.float32)
        w1s = w1s.at[:dd, :h].set(w1_d)                        # dense rows
        w1s = w1s.at[dl + self.store_off:dl + self.store_off + self.n_stores, :h].set(
            self.store_emb @ w1_s)
        w1s = w1s.at[dl + self.week_off:dl + self.week_off + self.n_weekday, :h].set(
            self.weekday_emb @ w1_w)
        w1s = w1s.at[dl + self.month_off:dl + self.month_off + self.n_monthday, :h].set(
            self.month_emb @ w1_m)

        w2p = jnp.zeros((self.H_PAD, self.H_PAD), jnp.float32).at[:h, :h].set(self.w2)
        w3p = jnp.zeros((self.H_PAD, self.OUT_PAD), jnp.float32).at[:h, :1].set(self.w3)
        b1p = jnp.zeros((1, self.H_PAD), jnp.float32).at[:, :h].set(self.b1)
        b2p = jnp.zeros((1, self.H_PAD), jnp.float32).at[:, :h].set(self.b2)
        b3p = jnp.zeros((1, self.OUT_PAD), jnp.float32).at[:, :1].set(self.b3)

        cd = self.compute_dtype  # MXU input dtype; accumulation stays f32.
        self.w1s_k = w1s.astype(cd)
        self.w2_k = w2p.astype(cd)
        self.w3_k = w3p.astype(cd)
        self.b1_k, self.b2_k, self.b3_k = b1p, b2p, b3p       # biases kept f32

    def __call__(self, inputs):
        # inputs: [B, input_dim] float32; col 0 = store id, col -2 = weekday id,
        # col -1 = monthday id, cols 1:-2 = dense features.
        b, d = inputs.shape
        assert d == self.input_dim

        # Batch tiling: prefer >=2 tiles so both v7x TensorCores get work.
        target_tiles = 2 if b >= 2 * BATCH_ALIGN else 1
        bt = min(self.block_b, _round_up(_cdiv(b, target_tiles), BATCH_ALIGN))
        bp = _round_up(b, bt)

        # Categorical ids as a separate int32 stream, clamped (nn.Embedding
        # would raise on out-of-range ids; we clamp to avoid cross-table
        # aliasing) and with table offsets pre-added.
        store = jnp.clip(inputs[:, 0].astype(jnp.int32), 0, self.n_stores - 1)
        week = jnp.clip(inputs[:, -2].astype(jnp.int32), 0, self.n_weekday - 1) + self.week_off
        month = jnp.clip(inputs[:, -1].astype(jnp.int32), 0, self.n_monthday - 1) + self.month_off
        ids = jnp.stack([store, week, month], axis=1)
        ids_pad = jnp.zeros((bp, 3), jnp.int32).at[:b].set(ids)

        # Dense features streamed at raw width (no lane padding in HBM).
        dense = inputs[:, 1:-2].astype(self.compute_dtype)
        x_pad = jnp.zeros((bp, self.d_dense), self.compute_dtype).at[:b].set(dense)

        out = fused_mlp_forward(
            ids_pad, x_pad, self.w1s_k, self.b1_k, self.w2_k, self.b2_k,
            self.w3_k, self.b3_k, block_b=bt, dense_lanes=self.dense_lanes)

        return out[:b]   # (B, 1) f32; padded batch rows are sliced away


# ----------------------------------- Demo ------------------------------------ #
if __name__ == "__main__":
    key = jax.random.PRNGKey(0)
    k_param, k_idx1, k_idx2, k_idx3, k_feat = jax.random.split(key, 5)

    # Small, forward-consistent shapes.
    n_stores, n_weekday, n_monthday = 16, 7, 31
    input_dim, hidden_size = 12, 32
    batch = 6  # deliberately not a multiple of the batch tile to exercise padding

    # Inputs: integer codes stored as floats (matches the PyTorch .type(long)).
    store_ids = jax.random.randint(k_idx1, (batch, 1), 0, n_stores).astype(jnp.float32)
    week_ids = jax.random.randint(k_idx2, (batch, 1), 0, n_weekday).astype(jnp.float32)
    month_ids = jax.random.randint(k_idx3, (batch, 1), 0, n_monthday).astype(jnp.float32)
    dense = jax.random.normal(k_feat, (batch, input_dim - 3), jnp.float32)
    inputs = jnp.concatenate((store_ids, dense, week_ids, month_ids), axis=1)

    # Default model: bf16 streaming/compute (f32 accumulation).
    model = FeedforwardModelPallas(k_param, n_stores, n_weekday, n_monthday,
                                   input_dim, hidden_size)
    out = model(inputs)
    jax.block_until_ready(out)
    assert out.shape == (batch, 1), out.shape

    # Pure-JAX reference (mirrors the PyTorch forward exactly, f32).
    def ref(x):
        s = jnp.take(model.store_emb, x[:, 0].astype(jnp.int32), axis=0)
        w = jnp.take(model.weekday_emb, x[:, -2].astype(jnp.int32), axis=0)
        m = jnp.take(model.month_emb, x[:, -1].astype(jnp.int32), axis=0)
        f = jnp.concatenate((s, w, m, x[:, 1:-2]), axis=1)
        h1 = jnp.maximum(f @ model.w1 + model.b1, 0.0)
        h2 = jnp.maximum(h1 @ model.w2 + model.b2, 0.0)
        return h2 @ model.w3 + model.b3

    ref_out = ref(inputs)
    assert jnp.allclose(out, ref_out, atol=1e-1, rtol=1e-1), (out, ref_out)

    # f32 variant (tighter tolerance; MXU default precision is bf16-ish).
    model_f32 = FeedforwardModelPallas(k_param, n_stores, n_weekday, n_monthday,
                                       input_dim, hidden_size,
                                       compute_dtype=jnp.float32)
    out_f32 = model_f32(inputs)
    jax.block_until_ready(out_f32)
    assert out_f32.shape == (batch, 1), out_f32.shape
    assert jnp.allclose(out_f32, ref_out, atol=2e-2, rtol=2e-2), (out_f32, ref_out)

    print("KERNEL_OK")
</pallas_src>

<mosaic_0001>
module attributes {stable_mosaic.version = 11 : i64} {
  func.func @_fused_mlp_kernel(%arg0: i32, %arg1: memref<16x3xi32, #tpu.memory_space<vmem>>, %arg2: memref<16x9xbf16, #tpu.memory_space<vmem>>, %arg3: memref<256x128xbf16, #tpu.memory_space<vmem>>, %arg4: memref<1x128xf32, #tpu.memory_space<vmem>>, %arg5: memref<128x128xbf16, #tpu.memory_space<vmem>>, %arg6: memref<1x128xf32, #tpu.memory_space<vmem>>, %arg7: memref<128x128xbf16, #tpu.memory_space<vmem>>, %arg8: memref<1x128xf32, #tpu.memory_space<vmem>>, %arg9: memref<16x1xf32, #tpu.memory_space<vmem>>, %arg10: memref<16x256xbf16, #tpu.memory_space<vmem>>) attributes {dimension_semantics = [#tpu.dimension_semantics<parallel>], iteration_bounds = array<i64: 1>, scalar_prefetch = 0 : i64, scratch_operands = 1 : i64, tpu.core_type = #tpu.core_type<tc>, window_params = [{transform_indices = @transform_0, window_bounds = array<i64: 16, 3>}, {transform_indices = @transform_1, window_bounds = array<i64: 16, 9>}, {pipeline_mode = #tpu.pipeline_mode<synchronous>, transform_indices = @transform_2, window_bounds = array<i64: 256, 128>}, {pipeline_mode = #tpu.pipeline_mode<synchronous>, transform_indices = @transform_3, window_bounds = array<i64: 1, 128>}, {pipeline_mode = #tpu.pipeline_mode<synchronous>, transform_indices = @transform_4, window_bounds = array<i64: 128, 128>}, {pipeline_mode = #tpu.pipeline_mode<synchronous>, transform_indices = @transform_5, window_bounds = array<i64: 1, 128>}, {pipeline_mode = #tpu.pipeline_mode<synchronous>, transform_indices = @transform_6, window_bounds = array<i64: 128, 128>}, {pipeline_mode = #tpu.pipeline_mode<synchronous>, transform_indices = @transform_7, window_bounds = array<i64: 1, 128>}, {transform_indices = @transform_8, window_bounds = array<i64: 16, 1>}]} {
    %c0 = arith.constant 0 : index
    %c0_0 = arith.constant 0 : index
    %0 = vector.load %arg2[%c0, %c0_0] : memref<16x9xbf16, #tpu.memory_space<vmem>>, vector<16x9xbf16>
    %c0_1 = arith.constant 0 : index
    %c0_2 = arith.constant 0 : index
    %1 = vector.load %arg1[%c0_1, %c0_2] : memref<16x3xi32, #tpu.memory_space<vmem>>, vector<16x3xi32>
    %2 = tpu.iota {dimensions = array<i32: 1>} : vector<16x128xi32>
    %3 = vector.extract_strided_slice %1 {offsets = [0, 0], sizes = [16, 1], strides = [1, 1]} : vector<16x3xi32> to vector<16x1xi32>
    %4 = vector.broadcast %3 : vector<16x1xi32> to vector<16x128xi32>
    %5 = arith.cmpi eq, %2, %4 : vector<16x128xi32>
    %6 = vector.extract_strided_slice %1 {offsets = [0, 1], sizes = [16, 1], strides = [1, 1]} : vector<16x3xi32> to vector<16x1xi32>
    %7 = vector.broadcast %6 : vector<16x1xi32> to vector<16x128xi32>
    %8 = arith.cmpi eq, %2, %7 : vector<16x128xi32>
    %9 = arith.ori %5, %8 : vector<16x128xi1>
    %10 = vector.extract_strided_slice %1 {offsets = [0, 2], sizes = [16, 1], strides = [1, 1]} : vector<16x3xi32> to vector<16x1xi32>
    %11 = vector.broadcast %10 : vector<16x1xi32> to vector<16x128xi32>
    %12 = arith.cmpi eq, %2, %11 : vector<16x128xi32>
    %13 = arith.ori %9, %12 : vector<16x128xi1>
    %14 = arith.extui %13 : vector<16x128xi1> to vector<16x128xi32>
    %15 = arith.sitofp %14 : vector<16x128xi32> to vector<16x128xf32>
    %16 = arith.truncf %15 : vector<16x128xf32> to vector<16x128xbf16>
    %cst = arith.constant 0.000000e+00 : bf16
    %17 = vector.broadcast %cst : bf16 to vector<16x256xbf16>
    %c0_3 = arith.constant 0 : index
    %c0_4 = arith.constant 0 : index
    %18 = vector.load %arg10[%c0_3, %c0_4] : memref<16x256xbf16, #tpu.memory_space<vmem>>, vector<16x256xbf16>
    tpu.vector_store %arg10[%c0_3, %c0_4], %17 {strides = array<i32>} : memref<16x256xbf16, #tpu.memory_space<vmem>>, vector<16x256xbf16>,
    %c0_5 = arith.constant 0 : index
    %c0_6 = arith.constant 0 : index
    %19 = vector.load %arg10[%c0_5, %c0_6] : memref<16x256xbf16, #tpu.memory_space<vmem>>, vector<16x9xbf16>
    tpu.vector_store %arg10[%c0_5, %c0_6], %0 {strides = array<i32>} : memref<16x256xbf16, #tpu.memory_space<vmem>>, vector<16x9xbf16>,
    %c0_7 = arith.constant 0 : index
    %c128 = arith.constant 128 : index
    %20 = vector.load %arg10[%c0_7, %c128] : memref<16x256xbf16, #tpu.memory_space<vmem>>, vector<16x128xbf16>
    tpu.vector_store %arg10[%c0_7, %c128], %16 {strides = array<i32>} : memref<16x256xbf16, #tpu.memory_space<vmem>>, vector<16x128xbf16>,
    %c0_8 = arith.constant 0 : index
    %c0_9 = arith.constant 0 : index
    %21 = vector.load %arg10[%c0_8, %c0_9] : memref<16x256xbf16, #tpu.memory_space<vmem>>, vector<16x256xbf16>
    %c0_10 = arith.constant 0 : index
    %c0_11 = arith.constant 0 : index
    %22 = vector.load %arg3[%c0_10, %c0_11] : memref<256x128xbf16, #tpu.memory_space<vmem>>, vector<256x128xbf16>
    %cst_12 = arith.constant dense<0.000000e+00> : vector<16x128xf32>
    %23 = tpu.matmul %21, %22, %cst_12 {dimension_numbers = #tpu.dot_dimension_numbers<[1], [0], [0], [1], [0, 0, 1, 1], [], []>} : vector<16x256xbf16>, vector<256x128xbf16>, vector<16x128xf32> -> vector<16x128xf32>
    %c0_13 = arith.constant 0 : index
    %c0_14 = arith.constant 0 : index
    %24 = vector.load %arg4[%c0_13, %c0_14] : memref<1x128xf32, #tpu.memory_space<vmem>>, vector<1x128xf32>
    %25 = vector.broadcast %24 : vector<1x128xf32> to vector<16x128xf32>
    %26 = arith.addf %23, %25 : vector<16x128xf32>
    %cst_15 = arith.constant 0.000000e+00 : f32
    %27 = vector.broadcast %cst_15 : f32 to vector<16x128xf32>
    %28 = arith.maximumf %26, %27 : vector<16x128xf32>
    %29 = arith.truncf %28 : vector<16x128xf32> to vector<16x128xbf16>
    %c0_16 = arith.constant 0 : index
    %c0_17 = arith.constant 0 : index
    %30 = vector.load %arg5[%c0_16, %c0_17] : memref<128x128xbf16, #tpu.memory_space<vmem>>, vector<128x128xbf16>
    %cst_18 = arith.constant dense<0.000000e+00> : vector<16x128xf32>
    %31 = tpu.matmul %29, %30, %cst_18 {dimension_numbers = #tpu.dot_dimension_numbers<[1], [0], [0], [1], [0, 0, 1, 1], [], []>} : vector<16x128xbf16>, vector<128x128xbf16>, vector<16x128xf32> -> vector<16x128xf32>
    %c0_19 = arith.constant 0 : index
    %c0_20 = arith.constant 0 : index
    %32 = vector.load %arg6[%c0_19, %c0_20] : memref<1x128xf32, #tpu.memory_space<vmem>>, vector<1x128xf32>
    %33 = vector.broadcast %32 : vector<1x128xf32> to vector<16x128xf32>
    %34 = arith.addf %31, %33 : vector<16x128xf32>
    %cst_21 = arith.constant 0.000000e+00 : f32
    %35 = vector.broadcast %cst_21 : f32 to vector<16x128xf32>
    %36 = arith.maximumf %34, %35 : vector<16x128xf32>
    %37 = arith.truncf %36 : vector<16x128xf32> to vector<16x128xbf16>
    %c0_22 = arith.constant 0 : index
    %c0_23 = arith.constant 0 : index
    %38 = vector.load %arg7[%c0_22, %c0_23] : memref<128x128xbf16, #tpu.memory_space<vmem>>, vector<128x128xbf16>
    %cst_24 = arith.constant dense<0.000000e+00> : vector<16x128xf32>
    %39 = tpu.matmul %37, %38, %cst_24 {dimension_numbers = #tpu.dot_dimension_numbers<[1], [0], [0], [1], [0, 0, 1, 1], [], []>} : vector<16x128xbf16>, vector<128x128xbf16>, vector<16x128xf32> -> vector<16x128xf32>
    %c0_25 = arith.constant 0 : index
    %c0_26 = arith.constant 0 : index
    %40 = vector.load %arg8[%c0_25, %c0_26] : memref<1x128xf32, #tpu.memory_space<vmem>>, vector<1x128xf32>
    %41 = vector.broadcast %40 : vector<1x128xf32> to vector<16x128xf32>
    %42 = arith.addf %39, %41 : vector<16x128xf32>
    %43 = vector.extract_strided_slice %42 {offsets = [0, 0], sizes = [16, 1], strides = [1, 1]} : vector<16x128xf32> to vector<16x1xf32>
    %c0_27 = arith.constant 0 : index
    %c0_28 = arith.constant 0 : index
    %44 = vector.load %arg9[%c0_27, %c0_28] : memref<16x1xf32, #tpu.memory_space<vmem>>, vector<16x1xf32>
    tpu.vector_store %arg9[%c0_27, %c0_28], %43 {strides = array<i32>} : memref<16x1xf32, #tpu.memory_space<vmem>>, vector<16x1xf32>,
    return
  }
  func.func @transform_0(%arg0: i32) -> (i32, i32) {
    %c0_i32 = arith.constant 0 : i32
    %c0_i32_0 = arith.constant 0 : i32
    return %arg0, %c0_i32 : i32, i32
  }
  func.func @transform_1(%arg0: i32) -> (i32, i32) {
    %c0_i32 = arith.constant 0 : i32
    %c0_i32_0 = arith.constant 0 : i32
    return %arg0, %c0_i32 : i32, i32
  }
  func.func @transform_2(%arg0: i32) -> (i32, i32) {
    %c0_i32 = arith.constant 0 : i32
    %c0_i32_0 = arith.constant 0 : i32
    %c0_i32_1 = arith.constant 0 : i32
    return %c0_i32, %c0_i32_0 : i32, i32
  }
  func.func @transform_3(%arg0: i32) -> (i32, i32) {
    %c0_i32 = arith.constant 0 : i32
    %c0_i32_0 = arith.constant 0 : i32
    %c0_i32_1 = arith.constant 0 : i32
    return %c0_i32, %c0_i32_0 : i32, i32
  }
  func.func @transform_4(%arg0: i32) -> (i32, i32) {
    %c0_i32 = arith.constant 0 : i32
    %c0_i32_0 = arith.constant 0 : i32
    %c0_i32_1 = arith.constant 0 : i32
    return %c0_i32, %c0_i32_0 : i32, i32
  }
  func.func @transform_5(%arg0: i32) -> (i32, i32) {
    %c0_i32 = arith.constant 0 : i32
    %c0_i32_0 = arith.constant 0 : i32
    %c0_i32_1 = arith.constant 0 : i32
    return %c0_i32, %c0_i32_0 : i32, i32
  }
  func.func @transform_6(%arg0: i32) -> (i32, i32) {
    %c0_i32 = arith.constant 0 : i32
    %c0_i32_0 = arith.constant 0 : i32
    %c0_i32_1 = arith.constant 0 : i32
    return %c0_i32, %c0_i32_0 : i32, i32
  }
  func.func @transform_7(%arg0: i32) -> (i32, i32) {
    %c0_i32 = arith.constant 0 : i32
    %c0_i32_0 = arith.constant 0 : i32
    %c0_i32_1 = arith.constant 0 : i32
    return %c0_i32, %c0_i32_0 : i32, i32
  }
  func.func @transform_8(%arg0: i32) -> (i32, i32) {
    %c0_i32 = arith.constant 0 : i32
    %c0_i32_0 = arith.constant 0 : i32
    return %arg0, %c0_i32 : i32, i32
  }
}

</mosaic_0001>

<bundles_post_ra>
// kernel: tpu_custom_call.1
= control target key start
LH: loop header
LB: loop body
LE: loop exit
PB: predicated region body
PF: predicated region fallthrough
CT: control target
= control target key end

     0   :  { %13 = vsyncpa [#allocation4], 0  ;;  %s925_s0 = inlined_call_operand.vmem [shape: s32[16,3], index: 0, kind: input, shape index: {}]   ;;  %s926_s1 = inlined_call_operand.vmem [shape: bf16[16,9], index: 1, kind: input, shape index: {}]   ;;  %s927_s2 = inlined_call_operand.hbm [shape: bf16[256,128], index: 2, kind: input, shape index: {}]   ;;  %s928_s3 = inlined_call_operand.vmem [shape: f32[1,128], index: 3, kind: input, shape index: {}]   ;;  %s929_s4 = inlined_call_operand.hbm [shape: bf16[128,128], index: 4, kind: input, shape index: {}]   ;;  %s930_s5 = inlined_call_operand.vmem [shape: f32[1,128], index: 5, kind: input, shape index: {}]   ;;  %s931_s6 = inlined_call_operand.hbm [shape: bf16[128,128], index: 6, kind: input, shape index: {}]   ;;  %s932_s7 = inlined_call_operand.vmem [shape: f32[1,128], index: 7, kind: input, shape index: {}]   ;;  %s933_s8 = inlined_call_operand.vmem [shape: f32[16,1], index: 8, kind: output, shape index: {}]  }
   0x1   :  { %14 = vsyncpa [#allocation6], 0  ;;  %s775_s27 = smov [#allocation5]   ;;  %s776_s29 = smov [#allocation3]  }
   0x2   :  { %s38_s28 = sshll.u32 %s775_s27, 4  ;;  %s24_s30 = sshll.u32 %s776_s29, 4  ;;  %s39_s28 = int_to_ptr.vmem [resolvable:$true] %s38_s28  ;;  %s831_s30 = int_to_ptr.vmem [resolvable:$true] %s24_s30 }
   0x3   :  { %s705_s11 = scalar_lea.hbm %s929_s4, 1024 }
   0x4   :  { %p706_p0 = scmp.ne.s32.totalorder %s929_s4, %s705_s11  ;;  %p709_p1 = scmp.lt.u32.totalorder %s705_s11, %s929_s4 }
   0x6   :  { %p711_p2 = pnand %p709_p1, %p706_p0 }
   0x8   :  { %714 = shalt.err (!%p711_p2)
}
   0x9   :  { %s715_s16 = scalar_lea.vmem %s39_s28, 1024  ;;  %p720_p4 = scmp.lt.s32.totalorder %s39_s28, %s39_s28 }
   0xa   :  { %p716_p3 = scmp.ne.s32.totalorder %s39_s28, %s715_s16  ;;  %p721_p5 = scmp.lt.s32.totalorder %s715_s16, %s715_s16 }
   0xc   :  { %p722_p6 = por %p721_p5, %p720_p4 }
   0xe   :  { %p723_p7 = pnand %p722_p6, %p716_p3 }
  0x10   :  { %726 = shalt.err (!%p723_p7)
}
  0x11   :  { %s777_s17 = smov 64   ;;  %s778_s18 = smov 4  }
  0x12   :  { %44 = dma.hbm_to_vmem [thread:$0]  %s929_s4, 1024, %s39_s28, [#allocation6], %s777_s17, %s777_s17, %s778_s18  }
  0x13   :  { %s727_s23 = scalar_lea.hbm %s927_s2, 2048 }
  0x14   :  { %p728_p8 = scmp.ne.s32.totalorder %s927_s2, %s727_s23  ;;  %p731_p9 = scmp.lt.u32.totalorder %s727_s23, %s927_s2 }
  0x16   :  { %p733_p10 = pnand %p731_p9, %p728_p8 }
  0x18   :  { %736 = shalt.err (!%p733_p10)
}
  0x19   :  { %s737_s29 = scalar_lea.vmem %s831_s30, 2048  ;;  %p742_p12 = scmp.lt.s32.totalorder %s831_s30, %s831_s30 }
  0x1a   :  { %p738_p11 = scmp.ne.s32.totalorder %s831_s30, %s737_s29  ;;  %p743_p13 = scmp.lt.s32.totalorder %s737_s29, %s737_s29 }
  0x1c   :  { %p744_p0 = por %p743_p13, %p742_p12 }
  0x1e   :  { %p745_p1 = pnand %p744_p0, %p738_p11 }
  0x20   :  { %748 = shalt.err (!%p745_p1)
}
  0x21   :  { %30 = dma.hbm_to_vmem [thread:$0]  %s927_s2, 2048, %s831_s30, [#allocation4], %s777_s17, %s777_s17, %s778_s18  }
  0x22   :  { %s779_s9 = smov [#allocation7]   ;;  %s749_s13 = scalar_lea.hbm %s931_s6, 1024 }
  0x23   :  { %s52_s10 = sshll.u32 %s779_s9, 4  ;;  %p750_p2 = scmp.ne.s32.totalorder %s931_s6, %s749_s13  ;;  %s53_s10 = int_to_ptr.vmem [resolvable:$true] %s52_s10 }
  0x24   :  { %p753_p3 = scmp.lt.u32.totalorder %s749_s13, %s931_s6 }
  0x26   :  { %p755_p4 = pnand %p753_p3, %p750_p2 }
  0x28   :  { %758 = shalt.err (!%p755_p4)
}
  0x29   :  { %s759_s20 = scalar_lea.vmem %s53_s10, 1024  ;;  %p764_p6 = scmp.lt.s32.totalorder %s53_s10, %s53_s10 }
  0x2a   :  { %p760_p5 = scmp.ne.s32.totalorder %s53_s10, %s759_s20  ;;  %p765_p7 = scmp.lt.s32.totalorder %s759_s20, %s759_s20 }
  0x2c   :  { %p766_p8 = por %p765_p7, %p764_p6 }
  0x2e   :  { %p767_p9 = pnand %p766_p8, %p760_p5 }
  0x30   :  { %770 = shalt.err (!%p767_p9)
}
  0x31   :  { %58 = dma.hbm_to_vmem [thread:$0]  %s931_s6, 1024, %s53_s10, [#allocation6], %s777_s17, %s777_s17, %s778_s18  }
  0x32   :  { %771 = dma.done.wait [#allocation4], 2048  }
  0x33   :  { %772 = vsyncadd [#allocation4], 4294965248 }
  0x34   :  { %773 = dma.done.wait [#allocation6], 2048  }
  0x35   :  { %774 = vsyncadd [#allocation6], 4294965248  ;;  %v780_v0 = vmov 1   ;;  %v781_v1 = vmov 0   ;;  %vm118_vm0 = vcmask 72704   ;;  %v670_v2 = vld [vmem:[%s926_s1] sm:$0xff]   ;;  %v75_v28 = vlaneseq }
  0x36   :  { %667 = vset.pattern.permute.xlu1 %v780_v0  ;;  %666 = vset.pattern.permute.xlu0 %v781_v1  ;;  %110 = vst [vmem:[#allocation2] sm:$0xff] %v781_v1  ;;  %v73_v3 = vld [vmem:[%s925_s0] sm:$0xff]  ;;  %v74_v4 = vld [vmem:[%s925_s0 + $0x8] sm:$0xff]  ;;  %v671_v5 = vld [vmem:[#allocation3 + $0x40] sm:$0xff]   ;;  %v782_v10 = vmov 0.0   ;;  %v783_v12 = vmov 2  }
  0x37   :  { %119 = vst.msk [vmem:[#allocation2] sm:$0xff] %vm118_vm0, %v670_v2  ;;  %86 = vperm.xlu1 %667, %v73_v3   ;;  %78 = vperm.xlu0 %666, %v73_v3   ;;  %v672_v6 = vld [vmem:[#allocation3] sm:$0xff]   ;;  %v673_v7 = vld [vmem:[#allocation3 + $0x48] sm:$0xff]   ;;  %v675_v9 = vld [vmem:[#allocation3 + $0x50] sm:$0xff]   ;;  %v76_v31 = vand.u32 127, %v75_v28  ;;  %vm785_vm12 = vmmov 0  }
  0x38   :  { %576 = vmatprep.subr.bf16.mxu0 %v671_v5  ;;  %v674_v8 = vld [vmem:[#allocation3 + $0x8] sm:$0xff]   ;;  %616 = vmatprep.subr.bf16.mxu1 %v782_v10  ;;  %v676_v11 = vld [vmem:[#allocation3 + $0x10] sm:$0xff]   ;;  %v677_v13 = vld [vmem:[#allocation3 + $0x58] sm:$0xff]   ;;  %v784_v37 = vmov 1.0|1.0   ;;  %vm529_vm13 = vcmask 7168  }
  0x39   :  { %577 = vmatpush3.bf16.msra.mxu0 %v672_v6  ;;  %v678_v14 = vld [vmem:[#allocation3 + $0x18] sm:$0xff]   ;;  %v679_v15 = vld [vmem:[#allocation3 + $0x60] sm:$0xff]   ;;  %v681_v17 = vld [vmem:[#allocation3 + $0x68] sm:$0xff]   ;;  %632 = vmatprep.mubr.msk.bf16.mxu1 %vm785_vm12, %v782_v10 }
  0x3a   :  { %578 = vmatprep.subr.bf16.mxu0 %v673_v7  ;;  %v680_v16 = vld [vmem:[#allocation3 + $0x20] sm:$0xff]   ;;  %v682_v19 = vld [vmem:[#allocation3 + $0x28] sm:$0xff]   ;;  %v683_v21 = vld [vmem:[#allocation3 + $0x70] sm:$0xff]  }
  0x3b   :  { %89 = vperm.xlu1 %667, %v74_v4   ;;  %81 = vperm.xlu0 %666, %v74_v4   ;;  %v687_v18 = vld [vmem:[#allocation5] sm:$0xff]   ;;  %v688_v20 = vld [vmem:[#allocation5 + $0x8] sm:$0xff]   ;;  %v689_v22 = vld [vmem:[#allocation5 + $0x10] sm:$0xff]  }
  0x3c   :  { %617 = vmatpush3.bf16.msra.mxu1 %v687_v18  ;;  %v684_v23 = vld [vmem:[#allocation3 + $0x30] sm:$0xff]   ;;  %v685_v24 = vld [vmem:[#allocation3 + $0x78] sm:$0xff]   ;;  %v691_v27 = vld [vmem:[#allocation5 + $0x20] sm:$0xff]  }
  0x3d   :  { %579 = vmatpush3.bf16.msra.mxu0 %v674_v8  ;;  %618 = vmatprep.subr.bf16.mxu1 %v782_v10  ;;  %v690_v25 = vld [vmem:[#allocation5 + $0x18] sm:$0xff]   ;;  %v692_v38 = vld [vmem:[#allocation5 + $0x28] sm:$0xff]   ;;  %v693_v39 = vld [vmem:[#allocation5 + $0x30] sm:$0xff]  }
  0x3e   :  { %580 = vmatprep.subr.bf16.mxu0 %v675_v9  ;;  %v686_v26 = vld [vmem:[#allocation3 + $0x38] sm:$0xff]   ;;  %v121_v36 = vld [vmem:[#allocation2] sm:$0xff]  ;;  %v695_v41 = vld [vmem:[#allocation7] sm:$0xff]  }
  0x3f   :  { %669 = vset.pattern.permute.xlu1 %v783_v12  ;;  %668 = vset.pattern.permute.xlu0 %v783_v12  ;;  %v694_v40 = vld [vmem:[#allocation5 + $0x38] sm:$0xff]   ;;  %v696_v42 = vld [vmem:[#allocation7 + $0x8] sm:$0xff]   ;;  %v697_v43 = vld [vmem:[#allocation7 + $0x10] sm:$0xff]  }
  0x40   :  { %99 = vperm.xlu1 %669, %v74_v4   ;;  %96 = vperm.xlu0 %668, %v73_v3   ;;  %v698_v44 = vld [vmem:[#allocation7 + $0x18] sm:$0xff]   ;;  %v699_v45 = vld [vmem:[#allocation7 + $0x20] sm:$0xff]   ;;  %v700_v46 = vld [vmem:[#allocation7 + $0x28] sm:$0xff]  }
  0x41   :  { %581 = vmatpush3.bf16.msra.mxu0 %v676_v11  ;;  %619 = vmatpush3.bf16.msra.mxu1 %v688_v20  ;;  %v541_v48 = vld [vmem:[%s928_s3] ss:$0 sm:$0xff]  ;;  %v702_v60 = vld [vmem:[#allocation7 + $0x38] sm:$0xff]  }
  0x42   :  { %582 = vmatprep.subr.bf16.mxu0 %v677_v13  ;;  %620 = vmatprep.subr.bf16.mxu1 %v782_v10  ;;  %v701_v59 = vld [vmem:[#allocation7 + $0x30] sm:$0xff]  }
  0x43   :  { %v558_v61 = vld [vmem:[%s930_s5] ss:$0 sm:$0xff] }
  0x44   :  { %v567_v7 = vld [vmem:[%s932_s7] ss:$0 sm:$0xff] }
  0x45   :  { %583 = vmatpush3.bf16.msra.mxu0 %v678_v14  ;;  %621 = vmatpush3.bf16.msra.mxu1 %v689_v22 }
  0x46   :  { %584 = vmatprep.subr.bf16.mxu0 %v679_v15  ;;  %622 = vmatprep.subr.bf16.mxu1 %v782_v10 }
  0x49   :  { %585 = vmatpush3.bf16.msra.mxu0 %v680_v16  ;;  %623 = vmatpush3.bf16.msra.mxu1 %v690_v25 }
  0x4a   :  { %586 = vmatprep.subr.bf16.mxu0 %v681_v17  ;;  %624 = vmatprep.subr.bf16.mxu1 %v782_v10 }
  0x4d   :  { %587 = vmatpush3.bf16.msra.mxu0 %v682_v19  ;;  %625 = vmatpush3.bf16.msra.mxu1 %v691_v27 }
  0x4e   :  { %588 = vmatprep.subr.bf16.mxu0 %v683_v21  ;;  %626 = vmatprep.subr.bf16.mxu1 %v782_v10 }
  0x51   :  { %589 = vmatpush3.bf16.msra.mxu0 %v684_v23  ;;  %627 = vmatpush3.bf16.msra.mxu1 %v692_v38 }
  0x52   :  { %590 = vmatprep.subr.bf16.mxu0 %v685_v24  ;;  %628 = vmatprep.subr.bf16.mxu1 %v782_v10 }
  0x55   :  { %591 = vmatpush3.bf16.msra.mxu0 %v686_v26  ;;  %629 = vmatpush3.bf16.msra.mxu1 %v693_v39 }
  0x56   :  { %636 = vmatprep.subr.bf16.mxu0 %v782_v10  ;;  %630 = vmatprep.subr.bf16.mxu1 %v782_v10 }
  0x59   :  { %631 = vmatpush3.bf16.msra.mxu1 %v694_v40 }
  0xb6   :  { %v87_v29 = vpop.permute.xlu1 %86  ;;  %v79_v30 = vpop.permute.xlu0 %78 }
  0xb7   :  { %vm91_vm1 = vcmp.eq.s32.totalorder %v76_v31, %v87_v29  ;;  %vm83_vm2 = vcmp.eq.s32.totalorder %v76_v31, %v79_v30 }
  0xb8   :  { %vm93_vm5 = vmor %vm83_vm2, %vm91_vm1 }
  0xba   :  { %v90_v32 = vpop.permute.xlu1 %89  ;;  %v82_v33 = vpop.permute.xlu0 %81 }
  0xbb   :  { %vm92_vm3 = vcmp.eq.s32.totalorder %v76_v31, %v90_v32  ;;  %vm84_vm4 = vcmp.eq.s32.totalorder %v76_v31, %v82_v33 }
  0xbc   :  { %vm94_vm6 = vmor %vm84_vm4, %vm92_vm3 }
  0xbf   :  { %v100_v34 = vpop.permute.xlu1 %99  ;;  %v97_v35 = vpop.permute.xlu0 %96 }
  0xc0   :  { %vm102_vm7 = vcmp.eq.s32.totalorder %v76_v31, %v100_v34  ;;  %vm101_vm8 = vcmp.eq.s32.totalorder %v76_v31, %v97_v35 }
  0xc1   :  { %vm104_vm9 = vmor %vm94_vm6, %vm102_vm7 }
  0xc2   :  { %vm103_vm10 = vmor %vm93_vm5, %vm101_vm8 }
  0xc3   :  { %vm703_vm11 = vmpackc.low %vm104_vm9, %vm103_vm10 }
  0xc4   :  { %704 = vmatprep.mubr.msk.bf16.mxu0 %vm703_vm11, %v784_v37 }
  0xc5   :  { %291 = vmatmul.mubr.bf16.vlgmr.msra.gmra.mrb[0].mxu0 %v121_v36 }
  0xc6   :  { %652 = vmatprep.mubr.msk.bf16.mxu0 %vm785_vm12, %v782_v10  ;;  %637 = vmatpush3.bf16.msra.mxu0 %v695_v41 }
  0xc7   :  { %638 = vmatprep.subr.bf16.mxu0 %v782_v10 }
  0xca   :  { %639 = vmatpush3.bf16.msra.mxu0 %v696_v42 }
  0xcb   :  { %640 = vmatprep.subr.bf16.mxu0 %v782_v10 }
  0xce   :  { %641 = vmatpush3.bf16.msra.mxu0 %v697_v43 }
  0xcf   :  { %642 = vmatprep.subr.bf16.mxu0 %v782_v10 }
  0xd2   :  { %643 = vmatpush3.bf16.msra.mxu0 %v698_v44 }
  0xd3   :  { %644 = vmatprep.subr.bf16.mxu0 %v782_v10 }
  0xd6   :  { %645 = vmatpush3.bf16.msra.mxu0 %v699_v45 }
  0xd7   :  { %646 = vmatprep.subr.bf16.mxu0 %v782_v10 }
  0xda   :  { %647 = vmatpush3.bf16.msra.mxu0 %v700_v46 }
  0xdb   :  { %648 = vmatprep.subr.bf16.mxu0 %v782_v10 }
  0xde   :  { %649 = vmatpush3.bf16.msra.mxu0 %v701_v59 }
  0xdf   :  { %650 = vmatprep.subr.bf16.mxu0 %v782_v10 }
  0xe2   :  { %651 = vmatpush3.bf16.msra.mxu0 %v702_v60 }
 0x198   :  { %v592_v47 = vpop.f32.mrb[0].mxu0 }
 0x199   :  { %v593_v49 = vpop.f32.mrb[1].mxu0 }
 0x19a   :  { %v594_v50 = vadd.f32 %v593_v49, %v592_v47  ;;  %v595_v51 = vpop.f32.mrb[2].mxu0 }
 0x19b   :  { %v596_v52 = vpop.f32.mrb[3].mxu0 }
 0x19c   :  { %v293_v53 = vadd.f32 %v594_v50, %v541_v48  ;;  %v597_v54 = vadd.f32 %v596_v52, %v595_v51 }
 0x19e   :  { %v296_v55 = vadd.f32 %v597_v54, %v541_v48  ;;  %v299_v56 = vmax.f32 %v293_v53, 0.0 }
 0x1a0   :  { %v300_v57 = vmax.f32 %v296_v55, 0.0 }
 0x1a2   :  { %v301_v58 = vpack.c.bf16 %v300_v57, %v299_v56 }
 0x1a4   :  { %633 = vmatmul.mubr.bf16.vlgmr.msra.gmra.mrb[0].mxu1 %v301_v58 }
 0x277   :  { %v407_v62 = vpop.f32.mrb[0].mxu1 }
 0x278   :  { %v408_v63 = vadd.f32 %v558_v61, %v407_v62  ;;  %v634_v0 = vpop.f32.mrb[1].mxu1 }
 0x279   :  { %v410_v1 = vpop.f32.mrb[2].mxu1 }
 0x27a   :  { %v411_v2 = vadd.f32 %v558_v61, %v410_v1  ;;  %v635_v3 = vpop.f32.mrb[3].mxu1  ;;  %v414_v4 = vmax.f32 %v408_v63, 0.0 }
 0x27c   :  { %v415_v5 = vmax.f32 %v411_v2, 0.0 }
 0x27e   :  { %v416_v6 = vpack.c.bf16 %v415_v5, %v414_v4 }
 0x280   :  { %653 = vmatmul.mubr.bf16.vlgmr.msra.gmra.mrb[4].mxu0 %v416_v6 }
 0x353   :  { %v522_v8 = vpop.f32.mrb[4].mxu0 }
 0x354   :  { %v523_v9 = vadd.f32 %v567_v7, %v522_v8  ;;  %v654_v10 = vpop.f32.mrb[5].mxu0 }
 0x355   :  { %v525_v11 = vpop.f32.mrb[6].mxu0 }
 0x356   :  { %530 = vst.msk [vmem:[%s933_s8] sm:$0xff] %vm529_vm13, %v523_v9  ;;  %v526_v12 = vadd.f32 %v567_v7, %v525_v11  ;;  %v655_v13 = vpop.f32.mrb[7].mxu0 }
 0x358   :  { %531 = vst.msk [vmem:[%s933_s8 + $0x8] sm:$0xff] %vm529_vm13, %v526_v12 }
 0x359   :  { %536 = vsyncpa [#allocation4], 1 }
 0x35a   :  { %537 = vsyncpa [#allocation6], 1 }

</bundles_post_ra>
